<compile_context>
chip_gen: v7x
topology: tpu7x:2x2x1
jax: 0.10.0
libtpu: 0.0.40
codegen_flags: <defaults>
</compile_context>

<pallas_src>
import jax
import jax.numpy as jnp
from jax import lax
from jax.experimental import pallas as pl
from jax.experimental.pallas import tpu as pltpu

LN_EPS = 1e-5  # PyTorch nn.LayerNorm default


def _fused_transpose_ln_kernel(x_ref, g_ref, b_ref, o_ref):
    """One (C, tile_n) slab of the NCHW map -> (tile_n, C) LayerNorm'd tokens.

    x_ref : (C, tile_n)   channels on sublanes, tokens on lanes (fused read of
                          the NCHW layout -- no separate transpose pass).
    g_ref : (C, 1)        LayerNorm weight (channel-major, broadcast over lanes).
    b_ref : (C, 1)        LayerNorm bias.
    o_ref : (tile_n, C)   output tokens, embed dim lane-dense.
    """
    x = x_ref[...].astype(jnp.float32)                    # (C, tile_n)
    # Per-token statistics: reduce over the channel (sublane) axis.  XLU/VPU/EUP
    # work here is filler under the HBM DMA bottleneck.
    mean = jnp.mean(x, axis=0, keepdims=True)              # (1, tile_n)
    xc = x - mean
    var = jnp.mean(xc * xc, axis=0, keepdims=True)         # biased var, like PyTorch LN
    inv = lax.rsqrt(var + LN_EPS)
    g = g_ref[...].astype(jnp.float32)                      # (C, 1)
    b = b_ref[...].astype(jnp.float32)
    # Affine + cast in the (C, tile_n) layout, BEFORE the transpose: one fewer
    # VPU pass after the transpose, and the transpose runs on packed data when
    # the output dtype is sub-32-bit.
    y = ((xc * inv) * g + b).astype(o_ref.dtype)            # (C, tile_n)
    o_ref[...] = pltpu.einshape("cn->nc", y)                 # (tile_n, C)


def _round_down(x, m):
    return (x // m) * m


def _round_up(x, m):
    return ((x + m - 1) // m) * m


def _vmem_capacity_bytes():
    try:
        info = pltpu.get_tpu_info()
        cap = getattr(info, "vmem_capacity_bytes", None)
        if cap:
            return int(cap)
    except Exception:
        pass
    return 64 << 20  # conservative: v7x per-TC physical VMEM


def _pick_tile_n(n_tokens, c, in_bytes, out_bytes, batch, vmem_cap):
    """Lane-aligned token tile: big enough to amortize per-step overhead,
    small enough for the real VMEM footprint, balanced across >= 2 grid steps."""
    if n_tokens <= 128:
        return n_tokens  # single full block; last dim == full array dim is legal

    # Per-column VMEM footprint:
    #   double-buffered input block  : 2 * C * in_bytes
    #   double-buffered output block : 2 * C * out_bytes
    #   ~3 f32 in-kernel temporaries : 3 * C * 4   (x, xc, y)
    per_col = 2 * c * (in_bytes + out_bytes) + 3 * c * 4
    budget = min(vmem_cap // 2, 24 << 20)
    t_cap = max(128, min(_round_down(budget // per_col, 128), 2048))
    t_cap = min(t_cap, max(128, _round_down(n_tokens, 128)))

    n_blocks = pl.cdiv(n_tokens, t_cap)
    # Keep >= 2 total grid steps so both v7x TensorCores get work.
    if batch * n_blocks < 2:
        n_blocks = 2
    # Balanced blocks: round the per-block size up to a lane multiple so
    # n_blocks * t still covers N (tail block is masked on store).
    t = _round_up(pl.cdiv(n_tokens, n_blocks), 128)
    return max(128, min(t, t_cap))


def patch_embed(x, gamma=None, beta=None, *, tile_n=None):
    """PatchEmbed.forward: (B, C, H, W) -> (B, H*W, C) [+ optional LayerNorm(C)]."""
    B, C, H, W = x.shape
    N = H * W
    x3 = x.reshape(B, C, N)  # free view of contiguous NCHW, no data movement

    if gamma is None and beta is None:
        # norm_layer=None: pure flatten(2).transpose(1, 2); nothing to compute,
        # so there is no DMA to save by writing a Pallas kernel for it.
        return jnp.transpose(x3, (0, 2, 1))

    # Guard partial affine params (PyTorch LayerNorm always has both).
    if gamma is None:
        gamma = jnp.ones((C,), dtype=x.dtype)
    if beta is None:
        beta = jnp.zeros((C,), dtype=jnp.asarray(gamma).dtype)

    in_bytes = jnp.dtype(x.dtype).itemsize
    out_bytes = in_bytes
    vmem_cap = _vmem_capacity_bytes()
    if tile_n is None:
        tile_n = _pick_tile_n(N, C, in_bytes, out_bytes, B, vmem_cap)
    n_blocks = pl.cdiv(N, tile_n)  # partial tail block is masked on store

    g2d = jnp.asarray(gamma).reshape(C, 1)
    b2d = jnp.asarray(beta).reshape(C, 1)

    # Real per-step footprint (double-buffered in/out blocks + f32 temporaries),
    # doubled for slack, clamped under physical VMEM.
    footprint = tile_n * C * (2 * (in_bytes + out_bytes) + 3 * 4)
    vmem_limit = int(min(vmem_cap * 7 // 8, max(2 * footprint, 16 << 20)))

    out = pl.pallas_call(
        _fused_transpose_ln_kernel,
        out_shape=jax.ShapeDtypeStruct((B, N, C), x.dtype),
        grid=(B, n_blocks),
        in_specs=[
            # (B, C, N): squeeze batch, take a full-C x tile_n slab of tokens.
            pl.BlockSpec((pl.Squeezed(), C, tile_n), lambda b, j: (b, 0, j)),
            pl.BlockSpec((C, 1), lambda b, j: (0, 0)),
            pl.BlockSpec((C, 1), lambda b, j: (0, 0)),
        ],
        # (B, N, C): lane-dense embed dim on the output store path.
        out_specs=pl.BlockSpec((pl.Squeezed(), tile_n, C), lambda b, j: (b, j, 0)),
        compiler_params=pltpu.CompilerParams(
            dimension_semantics=("parallel", "parallel"),
            vmem_limit_bytes=vmem_limit,
        ),
    )(x3, g2d, b2d)
    return out


if __name__ == "__main__":
    def _ref(x, gamma=None, beta=None):
        B, C, H, W = x.shape
        tokens = jnp.transpose(x.reshape(B, C, H * W), (0, 2, 1))
        if gamma is None and beta is None:
            return tokens
        if gamma is None:
            gamma = jnp.ones((C,), jnp.float32)
        if beta is None:
            beta = jnp.zeros((C,), jnp.float32)
        t32 = tokens.astype(jnp.float32)
        mu = jnp.mean(t32, axis=-1, keepdims=True)
        var = jnp.mean((t32 - mu) ** 2, axis=-1, keepdims=True)
        y = (t32 - mu) * lax.rsqrt(var + LN_EPS) * gamma.astype(jnp.float32) \
            + beta.astype(jnp.float32)
        return y.astype(x.dtype)

    # Case 1: LayerNorm path, lane-friendly embed dim (B=2, C=128, 16x16 map).
    B, C, H, W = 2, 128, 16, 16
    kx, kg, kb = jax.random.split(jax.random.PRNGKey(0), 3)
    x = jax.random.normal(kx, (B, C, H, W), dtype=jnp.float32)
    gamma = 1.0 + 0.1 * jax.random.normal(kg, (C,), dtype=jnp.float32)
    beta = 0.1 * jax.random.normal(kb, (C,), dtype=jnp.float32)
    out = jax.block_until_ready(patch_embed(x, gamma, beta))
    assert out.shape == (B, H * W, C)
    assert jnp.max(jnp.abs(out - _ref(x, gamma, beta))) < 1e-4

    # Case 2: non-128-divisible token count -> masked partial tail tile, and
    # B=1 exercises the balanced >=2-block split (B=1, C=96, 14x14 -> N=196).
    B2, C2, H2, W2 = 1, 96, 14, 14
    k2x, k2g, k2b = jax.random.split(jax.random.PRNGKey(1), 3)
    x2 = jax.random.normal(k2x, (B2, C2, H2, W2), dtype=jnp.float32)
    g2 = 1.0 + 0.1 * jax.random.normal(k2g, (C2,), dtype=jnp.float32)
    b2 = 0.1 * jax.random.normal(k2b, (C2,), dtype=jnp.float32)
    out2 = jax.block_until_ready(patch_embed(x2, g2, b2))
    assert out2.shape == (B2, H2 * W2, C2)
    assert jnp.max(jnp.abs(out2 - _ref(x2, g2, b2))) < 1e-4

    # Case 2b: gamma given without beta (guarded path).
    out2b = jax.block_until_ready(patch_embed(x2, g2, None))
    assert jnp.max(jnp.abs(out2b - _ref(x2, g2, None))) < 1e-4

    # Case 3: bf16 in/out exercises the cast-before-transpose (packed transpose).
    xb = x.astype(jnp.bfloat16)
    gb = gamma.astype(jnp.bfloat16)
    bb = beta.astype(jnp.bfloat16)
    out3 = jax.block_until_ready(patch_embed(xb, gb, bb))
    assert out3.shape == (B, H * W, C)
    diff_b = jnp.max(jnp.abs(out3.astype(jnp.float32)
                             - _ref(xb, gb, bb).astype(jnp.float32)))
    assert diff_b < 5e-2  # bf16 rounding tolerance

    # Case 4: norm_layer=None path (pure flatten + transpose).
    out4 = jax.block_until_ready(patch_embed(x))
    assert out4.shape == (B, H * W, C)
    assert jnp.array_equal(out4, _ref(x))

    print("KERNEL_OK")
</pallas_src>

<mosaic_0001>
module attributes {stable_mosaic.version = 11 : i64} {
  func.func @_fused_transpose_ln_kernel(%arg0: i32, %arg1: i32, %arg2: memref<1x128x256xf32, #tpu.memory_space<vmem>>, %arg3: memref<128x1xf32, #tpu.memory_space<vmem>>, %arg4: memref<128x1xf32, #tpu.memory_space<vmem>>, %arg5: memref<1x256x128xf32, #tpu.memory_space<vmem>>) attributes {dimension_semantics = [#tpu.dimension_semantics<parallel>, #tpu.dimension_semantics<parallel>], iteration_bounds = array<i64: 2, 1>, scalar_prefetch = 0 : i64, scratch_operands = 0 : i64, tpu.core_type = #tpu.core_type<tc>, window_params = [{transform_indices = @transform_0, window_bounds = array<i64: 1, 128, 256>}, {pipeline_mode = #tpu.pipeline_mode<synchronous>, transform_indices = @transform_1, window_bounds = array<i64: 128, 1>}, {pipeline_mode = #tpu.pipeline_mode<synchronous>, transform_indices = @transform_2, window_bounds = array<i64: 128, 1>}, {transform_indices = @transform_3, window_bounds = array<i64: 1, 256, 128>}]} {
    %c0 = arith.constant 0 : index
    %c0_0 = arith.constant 0 : index
    %c0_1 = arith.constant 0 : index
    %0 = vector.load %arg2[%c0, %c0_0, %c0_1] : memref<1x128x256xf32, #tpu.memory_space<vmem>>, vector<1x128x256xf32>
    %1 = vector.shape_cast %0 : vector<1x128x256xf32> to vector<128x256xf32>
    %cst = arith.constant dense<0.000000e+00> : vector<256xf32>
    %2 = vector.multi_reduction <add>, %1, %cst [0] : vector<128x256xf32> to vector<256xf32>
    %3 = vector.shape_cast %2 : vector<256xf32> to vector<1x256xf32>
    %cst_2 = arith.constant 1.280000e+02 : f32
    %4 = vector.broadcast %cst_2 : f32 to vector<1x256xf32>
    %5 = arith.divf %3, %4 : vector<1x256xf32>
    %6 = vector.broadcast %5 : vector<1x256xf32> to vector<128x256xf32>
    %7 = arith.subf %1, %6 : vector<128x256xf32>
    %8 = arith.mulf %7, %7 : vector<128x256xf32>
    %cst_3 = arith.constant dense<0.000000e+00> : vector<256xf32>
    %9 = vector.multi_reduction <add>, %8, %cst_3 [0] : vector<128x256xf32> to vector<256xf32>
    %10 = vector.shape_cast %9 : vector<256xf32> to vector<1x256xf32>
    %cst_4 = arith.constant 1.280000e+02 : f32
    %11 = vector.broadcast %cst_4 : f32 to vector<1x256xf32>
    %12 = arith.divf %10, %11 : vector<1x256xf32>
    %cst_5 = arith.constant 9.99999974E-6 : f32
    %13 = vector.broadcast %cst_5 : f32 to vector<1x256xf32>
    %14 = arith.addf %12, %13 : vector<1x256xf32>
    %15 = math.rsqrt %14 : vector<1x256xf32>
    %c0_6 = arith.constant 0 : index
    %c0_7 = arith.constant 0 : index
    %16 = vector.load %arg3[%c0_6, %c0_7] : memref<128x1xf32, #tpu.memory_space<vmem>>, vector<128x1xf32>
    %c0_8 = arith.constant 0 : index
    %c0_9 = arith.constant 0 : index
    %17 = vector.load %arg4[%c0_8, %c0_9] : memref<128x1xf32, #tpu.memory_space<vmem>>, vector<128x1xf32>
    %18 = vector.broadcast %15 : vector<1x256xf32> to vector<128x256xf32>
    %19 = arith.mulf %7, %18 : vector<128x256xf32>
    %20 = vector.broadcast %16 : vector<128x1xf32> to vector<128x256xf32>
    %21 = arith.mulf %19, %20 : vector<128x256xf32>
    %22 = vector.broadcast %17 : vector<128x1xf32> to vector<128x256xf32>
    %23 = arith.addf %21, %22 : vector<128x256xf32>
    %24 = tpu.transpose %23, [1, 0] : vector<128x256xf32> -> vector<256x128xf32>
    %c0_10 = arith.constant 0 : index
    %c0_11 = arith.constant 0 : index
    %c0_12 = arith.constant 0 : index
    %25 = vector.load %arg5[%c0_10, %c0_11, %c0_12] : memref<1x256x128xf32, #tpu.memory_space<vmem>>, vector<1x256x128xf32>
    %26 = vector.shape_cast %25 : vector<1x256x128xf32> to vector<256x128xf32>
    %27 = vector.shape_cast %24 : vector<256x128xf32> to vector<1x256x128xf32>
    tpu.vector_store %arg5[%c0_10, %c0_11, %c0_12], %27 {strides = array<i32>} : memref<1x256x128xf32, #tpu.memory_space<vmem>>, vector<1x256x128xf32>,
    return
  }
  func.func @transform_0(%arg0: i32, %arg1: i32) -> (i32, i32, i32) {
    %c0_i32 = arith.constant 0 : i32
    %c0_i32_0 = arith.constant 0 : i32
    return %arg0, %c0_i32, %arg1 : i32, i32, i32
  }
  func.func @transform_1(%arg0: i32, %arg1: i32) -> (i32, i32) {
    %c0_i32 = arith.constant 0 : i32
    %c0_i32_0 = arith.constant 0 : i32
    %c0_i32_1 = arith.constant 0 : i32
    return %c0_i32, %c0_i32_0 : i32, i32
  }
  func.func @transform_2(%arg0: i32, %arg1: i32) -> (i32, i32) {
    %c0_i32 = arith.constant 0 : i32
    %c0_i32_0 = arith.constant 0 : i32
    %c0_i32_1 = arith.constant 0 : i32
    return %c0_i32, %c0_i32_0 : i32, i32
  }
  func.func @transform_3(%arg0: i32, %arg1: i32) -> (i32, i32, i32) {
    %c0_i32 = arith.constant 0 : i32
    %c0_i32_0 = arith.constant 0 : i32
    return %arg0, %arg1, %c0_i32 : i32, i32, i32
  }
}

</mosaic_0001>

<bundles_post_ra>
// kernel: tpu_custom_call.1
= control target key start
LH: loop header
LB: loop body
LE: loop exit
PB: predicated region body
PF: predicated region fallthrough
CT: control target
= control target key end

     0   :  { %8 = vsyncpa [#allocation3], 0  ;;  %s1840_s0 = inlined_call_operand.hbm [shape: f32[2,128,256], index: 0, kind: input, shape index: {}]   ;;  %s1841_s1 = inlined_call_operand.vmem [shape: f32[128,1], index: 1, kind: input, shape index: {}]   ;;  %s1842_s2 = inlined_call_operand.vmem [shape: f32[128,1], index: 2, kind: input, shape index: {}]   ;;  %s1843_s3 = inlined_call_operand.hbm [shape: f32[2,256,128], index: 3, kind: output, shape index: {}]  }
   0x1   :  { %10 = vsyncpa [#allocation3 + $0x1], 0 }
   0x2   :  { %11 = vsyncpa [#allocation4], 0 }
   0x3   :  { %13 = vsyncpa [#allocation4 + $0x1], 0  ;;  %s1116_s12 = smov 0   ;;  %s1118_s13 = smov 0  }
   0x4   :  { %s1120_s14 = smov 0   ;;  %s1122_s15 = smov 0  }
   0x5   :  { %s1124_s16 = smov 0   ;;  %s1126_s17 = smov 0  }
   0x6 LB: > { %s885_s18 = sadd.s32 4294967295, %s1087_s17   ;;  %s886_s19 = sadd.s32 4294967294, %s1087_s17   ;;  %s1087_s17 = sphi %s1126_s17, %s19_s17   ;;  %s1083_s16 = sphi %s1124_s16, %s1858_s16   ;;  %s1079_s15 = sphi %s1122_s15, %s1857_s15   ;;  %s1075_s14 = sphi %s1120_s14, %s1856_s14   ;;  %s1071_s13 = sphi %s1118_s13, %s1855_s13   ;;  %s1067_s12 = sphi %s1116_s12, %s1854_s12  }
   0x7   : > { %s31_s20 = sadd.s32 1, %s1083_s16  ;;  %s40_s21 = sadd.s32 1, %s1075_s14 }
   0x8   : > { %p33_p0 = scmp.ge.s32.totalorder %s31_s20, 2  ;;  %p47_p1 = scmp.ne.s32.totalorder %s1075_s14, %s1071_s13 }
   0x9   : > { %p48_p2 = scmp.eq.s32.totalorder %s1087_s17, 0  ;;  %p53_p3 = scmp.ne.s32.totalorder %s1071_s13, %s1067_s12 }
   0xa   : > { %s1860_s20 = smov (%p33_p0, %s31_s20), 0  ;;  %p54_p5 = scmp.eq.s32.totalorder %s885_s18, 0 }
   0xb   : > { %p1157_p4 = por %p48_p2, %p47_p1  ;;  %s35_s23 = ssub.s32 %s1083_s16, %s1860_s20 }
   0xc   : > { %p121_p6 = scmp.eq.s32.totalorder %s885_s18, 1  ;;  %p38_p7 = scmp.eq.s32.totalorder %s35_s23, 0 }
   0xd   : > { %p1163_p8 = por %p54_p5, %p53_p3  ;;  %p127_p10 = scmp.eq.s32.totalorder %s886_s19, 1 }
   0xe   : > { %p1167_p9 = por %p121_p6, %p47_p1  ;;  %p914_p13 = scmp.lt.s32.totalorder %s1087_s17, 2 }
   0xf   : > { %s1172_s26 = scalar_select %p38_p7, %s1075_s14, %s40_s21  }
  0x10   : > { %s1847_s25 = scalar_select %p1167_p9, 1, 0 }
  0x11   : > { %p1174_p11 = por %p127_p10, %p53_p3  ;;  %s153_s28 = sand.u32 1, %s1075_s14  }
  0x12   : > { %s889_s29 = sshll.u32 %s153_s28, 8  ;;  %s900_s30 = sshll.u32 %s1083_s16, 12 }
  0x13   : > { %s1848_s27 = scalar_select %p1174_p11, 1, 0 }
  0x14   : > { %s1185_s6 = scalar_lea.hbm %s1840_s0, %s900_s30  ;;  %s157_s7 = scalar_lea.vmem [#allocation2], %s889_s29 }
  0x15   : > { %s166_s8 = sshll.u32 %s157_s7, 4  ;;  %p1191_p0 = pnand %p914_p13, %p1157_p4  ;;  %s1187_s8 = int_to_ptr.vmem [resolvable:$true] %s166_s8 }
  0x16   : > { %s1196_s10 = scalar_lea.sflag [#allocation3], %s153_s28  ;;  %s975_s11 = scalar_lea.hbm %s1185_s6, 4096 }
  0x17   : > { %p976_p2 = scmp.ne.s32.totalorder %s1185_s6, %s975_s11  ;;  %p977_p3 = pneg %p1191_p0 }
  0x18   : > { %s980_s21 = scalar_lea.hbm %s1840_s0, 8192  ;;  %p981_p4 = scmp.lt.u32.totalorder %s1185_s6, %s1840_s0 }
  0x19   : > { %p978_p5 = pnand %p977_p3, %p976_p2  ;;  %p982_p7 = scmp.lt.u32.totalorder %s980_s21, %s975_s11 }
  0x1a   : > { %p984_p13 = scmp.lt.u32.totalorder %s975_s11, %s1185_s6 }
  0x1b   : > { %p979_p6 = pneg %p978_p5  ;;  %p983_p10 = por %p982_p7, %p981_p4 }
  0x1d   : > { %p985_p12 = por %p984_p13, %p983_p10 }
  0x1f   : > { %p986_p1 = pnand %p985_p12, %p979_p6 }
  0x21   : > { %989 = shalt.err (!%p986_p1)
}
  0x22   : > { %s990_s28 = scalar_lea.vmem %s1187_s8, 4096  ;;  %s1089_s29 = smov [#allocation2]  }
  0x23   : > { %p991_p2 = scmp.ne.s32.totalorder %s1187_s8, %s990_s28  ;;  %s995_s30 = sshll.u32 %s1089_s29, 4  ;;  %s996_s30 = int_to_ptr.vmem [resolvable:$false] %s995_s30 }
  0x24   : > { %s997_s4 = scalar_lea.vmem %s996_s30, 8192  ;;  %p998_p9 = scmp.lt.s32.totalorder %s1187_s8, %s996_s30 }
  0x25   : > { %p993_p5 = pnand %p991_p2, %p977_p3  ;;  %p999_p4 = scmp.lt.s32.totalorder %s997_s4, %s990_s28 }
  0x27   : > { %p994_p11 = pneg %p993_p5  ;;  %p1000_p7 = por %p999_p4, %p998_p9 }
  0x29   : > { %p1001_p10 = pnand %p1000_p7, %p994_p11 }
  0x2b   : > { %1004 = shalt.err (!%p1001_p10)
}
  0x2c   : > { %s1090_s5 = smov 256   ;;  %s1091_s7 = smov 16  }
  0x2d   : > { %909 = dma.hbm_to_vmem [thread:$0]  (!%p1191_p0), %s1185_s6, 4096, %s1187_s8, %s1196_s10, %s1090_s5, %s1090_s5, %s1091_s7  }
  0x2e   : > { %p174_p12 = scmp.lt.s32.totalorder %s1087_s17, 3  ;;  %p1850_p1 = scmp.ge.s32.totalorder %s1087_s17, 1 }
  0x30   : > { %p175_p3 = pnand %p1850_p1, %p174_p12 }
  0x31   : > { %s1228_s11 = sand.u32 (!%p175_p3), 1, %s1071_s13  }
  0x32   : > { %178 = sbr.rel (%p175_p3) target bundleno = 414 (0x19e), region = 32  ;;  %s893_s18 = sshll.u32 (!%p175_p3), %s1228_s11, 8 }
  0x33   : > { %s181_s19 = scalar_lea.sflag (!%p175_p3), [#allocation3], %s1228_s11  ;;  %s1234_s21 = scalar_lea.vmem (!%p175_p3), [#allocation2], %s893_s18 }
  0x39   : > { %1058 = dma.done.wait (%p1163_p8), %s181_s19, 4096  }
  0x3a   : > { %1060 = vsyncadd (%p1163_p8), %s181_s19, 4294963200  ;;  %v1092_v0 = vmov 0   ;;  %v400_v1 = vld [vmem:[%s1841_s1 + $0x10] sm:$0xff]  ;;  %v398_v2 = vld [vmem:[%s1841_s1] sm:$0xff]  ;;  %s1750_s23 = scalar_lea.vmem [#allocation5], %s893_s18  ;;  %s901_s18 = sshll.u32 %s1079_s15, 12 }
  0x3b   : > { %970 = vset.pattern.permute.xlu1 %v1092_v0  ;;  %969 = vset.pattern.permute.xlu0 %v1092_v0  ;;  %v401_v3 = vld [vmem:[%s1841_s1 + $0x18] sm:$0xff]  ;;  %v399_v4 = vld [vmem:[%s1841_s1 + $0x8] sm:$0xff]  ;;  %v402_v6 = vld [vmem:[%s1841_s1 + $0x20] sm:$0xff]  ;;  %s798_s28 = sshll.u32 %s1750_s23, 4  ;;  %s1787_s4 = scalar_lea.hbm %s1843_s3, %s901_s18  ;;  %s1789_s28 = int_to_ptr.vmem [resolvable:$true] %s798_s28 }
  0x3c   : > { %474 = vperm.xlu1 %970, %v400_v1   ;;  %464 = vperm.xlu0 %969, %v398_v2   ;;  %v403_v5 = vld [vmem:[%s1841_s1 + $0x28] sm:$0xff]  ;;  %v405_v7 = vld [vmem:[%s1841_s1 + $0x38] sm:$0xff]  ;;  %v404_v8 = vld [vmem:[%s1841_s1 + $0x30] sm:$0xff]  ;;  %s783_s15 = scalar_lea.sflag [#allocation4], %s1228_s11  ;;  %s1005_s5 = scalar_lea.vmem %s1789_s28, 4096 }
  0x3d   : > { %v1265_v9 = vld [vmem:[%s1234_s21] sm:$0xff]  ;;  %v1268_v10 = vld [vmem:[%s1234_s21 + $0x8] sm:$0xff]  ;;  %v1271_v11 = vld [vmem:[%s1234_s21 + $0x10] sm:$0xff]  ;;  %p1006_p8 = scmp.ne.s32.totalorder %s1789_s28, %s1005_s5  ;;  %p1851_p9 = scmp.ne.s32.totalorder %s1847_s25, 0 }
  0x3e   : > { %v1274_v12 = vld [vmem:[%s1234_s21 + $0x18] sm:$0xff]  ;;  %v1277_v13 = vld [vmem:[%s1234_s21 + $0x20] sm:$0xff]  ;;  %v1280_v14 = vld [vmem:[%s1234_s21 + $0x28] sm:$0xff]  ;;  %v241_v15 = vadd.f32 %v1271_v11, %v1265_v9  ;;  %s1093_s7 = smov [#allocation5]  }
  0x3f   : > { %v262_v16 = vadd.f32 %v1274_v12, %v1268_v10  ;;  %v1287_v17 = vld [vmem:[%s1234_s21 + $0x30] sm:$0xff]  ;;  %v1290_v18 = vld [vmem:[%s1234_s21 + $0x38] sm:$0xff]  ;;  %v407_v19 = vld [vmem:[%s1841_s1 + $0x48] sm:$0xff]  ;;  %p1007_p11 = pnand %p1006_p8, %p1851_p9  ;;  %s1009_s19 = sshll.u32 %s1093_s7, 4  ;;  %s1010_s19 = int_to_ptr.vmem [resolvable:$false] %s1009_s19 }
  0x40   : > { %479 = vperm.xlu1 %970, %v401_v3   ;;  %469 = vperm.xlu0 %969, %v399_v4   ;;  %v406_v20 = vld [vmem:[%s1841_s1 + $0x40] sm:$0xff]  ;;  %v242_v21 = vadd.f32 %v241_v15, %v1277_v13  ;;  %v1304_v24 = vld [vmem:[%s1234_s21 + $0x48] sm:$0xff]  ;;  %v1309_v27 = vld [vmem:[%s1234_s21 + $0x50] sm:$0xff]  ;;  %s1011_s6 = scalar_lea.vmem %s1010_s19, 8192  ;;  %p1012_p6 = scmp.lt.s32.totalorder %s1789_s28, %s1010_s19 }
  0x41   : > { %v263_v22 = vadd.f32 %v262_v16, %v1280_v14  ;;  %v1301_v23 = vld [vmem:[%s1234_s21 + $0x40] sm:$0xff]  ;;  %v1312_v28 = vld [vmem:[%s1234_s21 + $0x58] sm:$0xff]  ;;  %v408_v30 = vld [vmem:[%s1841_s1 + $0x50] sm:$0xff]  ;;  %p1008_p0 = pneg %p1007_p11  ;;  %p1013_p13 = scmp.lt.s32.totalorder %s1011_s6, %s1005_s5 }
  0x42   : > { %v243_v25 = vadd.f32 %v242_v21, %v1287_v17  ;;  %v414_v29 = vld [vmem:[%s1842_s2] sm:$0xff]  ;;  %v1326_v34 = vld [vmem:[%s1234_s21 + $0x68] sm:$0xff]  ;;  %v1331_v37 = vld [vmem:[%s1234_s21 + $0x70] sm:$0xff] }
  0x43   : > { %v264_v26 = vadd.f32 %v263_v22, %v1290_v18  ;;  %v1323_v33 = vld [vmem:[%s1234_s21 + $0x60] sm:$0xff]  ;;  %v1334_v38 = vld [vmem:[%s1234_s21 + $0x78] sm:$0xff]  ;;  %v416_v39 = vld [vmem:[%s1842_s2 + $0x10] sm:$0xff]  ;;  %p1014_p2 = por %p1013_p13, %p1012_p6 }
  0x44   : > { %489 = vperm.xlu1 %970, %v403_v5   ;;  %484 = vperm.xlu0 %969, %v402_v6   ;;  %v244_v31 = vadd.f32 %v243_v25, %v1301_v23  ;;  %v415_v40 = vld [vmem:[%s1842_s2 + $0x8] sm:$0xff]  ;;  %v1345_v43 = vld [vmem:[%s1234_s21 + $0x80] sm:$0xff]  ;;  %v1353_v47 = vld [vmem:[%s1234_s21 + $0x90] sm:$0xff] }
  0x45   : > { %v265_v32 = vadd.f32 %v264_v26, %v1304_v24  ;;  %v1348_v44 = vld [vmem:[%s1234_s21 + $0x88] sm:$0xff]  ;;  %v1356_v48 = vld [vmem:[%s1234_s21 + $0x98] sm:$0xff]  ;;  %v418_v49 = vld [vmem:[%s1842_s2 + $0x20] sm:$0xff]  ;;  %p1015_p5 = pnand %p1014_p2, %p1008_p0 }
  0x46   : > { %v245_v35 = vadd.f32 %v244_v31, %v1309_v27  ;;  %v417_v50 = vld [vmem:[%s1842_s2 + $0x18] sm:$0xff]  ;;  %v1367_v53 = vld [vmem:[%s1234_s21 + $0xa0] sm:$0xff]  ;;  %v1370_v54 = vld [vmem:[%s1234_s21 + $0xa8] sm:$0xff] }
  0x47   : > { %v266_v36 = vadd.f32 %v265_v32, %v1312_v28  ;;  %v1375_v57 = vld [vmem:[%s1234_s21 + $0xb0] sm:$0xff]  ;;  %v1378_v58 = vld [vmem:[%s1234_s21 + $0xb8] sm:$0xff]  ;;  %v419_v60 = vld [vmem:[%s1842_s2 + $0x28] sm:$0xff] }
  0x48   : > { %499 = vperm.xlu1 %970, %v405_v7   ;;  %494 = vperm.xlu0 %969, %v404_v8   ;;  %v246_v41 = vadd.f32 %v245_v35, %v1323_v33  ;;  %v420_v59 = vld [vmem:[%s1842_s2 + $0x30] sm:$0xff]  ;;  %v1389_v63 = vld [vmem:[%s1234_s21 + $0xc0] sm:$0xff]  ;;  %v1392_v0 = vld [vmem:[%s1234_s21 + $0xc8] sm:$0xff] }
  0x49   : > { %v267_v42 = vadd.f32 %v266_v36, %v1326_v34  ;;  %v1397_v3 = vld [vmem:[%s1234_s21 + $0xd0] sm:$0xff]  ;;  %v1400_v4 = vld [vmem:[%s1234_s21 + $0xd8] sm:$0xff]  ;;  %v422_v5 = vld [vmem:[%s1842_s2 + $0x40] sm:$0xff] }
  0x4a   : > { %v247_v45 = vadd.f32 %v246_v41, %v1331_v37  ;;  %v421_v6 = vld [vmem:[%s1842_s2 + $0x38] sm:$0xff]  ;;  %v1411_v15 = vld [vmem:[%s1234_s21 + $0xe0] sm:$0xff]  ;;  %v1414_v16 = vld [vmem:[%s1234_s21 + $0xe8] sm:$0xff] }
  0x4b   : > { %v268_v46 = vadd.f32 %v267_v42, %v1334_v38  ;;  %v1419_v21 = vld [vmem:[%s1234_s21 + $0xf0] sm:$0xff]  ;;  %v1422_v22 = vld [vmem:[%s1234_s21 + $0xf8] sm:$0xff]  ;;  %v423_v26 = vld [vmem:[%s1842_s2 + $0x48] sm:$0xff] }
  0x4c   : > { %509 = vperm.xlu1 %970, %v407_v19   ;;  %504 = vperm.xlu0 %969, %v406_v20   ;;  %v248_v51 = vadd.f32 %v247_v45, %v1345_v43  ;;  %v409_v25 = vld [vmem:[%s1841_s1 + $0x58] sm:$0xff]  ;;  %v410_v35 = vld [vmem:[%s1841_s1 + $0x60] sm:$0xff]  ;;  %v424_v36 = vld [vmem:[%s1842_s2 + $0x50] sm:$0xff] }
  0x4d   : > { %v269_v52 = vadd.f32 %v268_v46, %v1348_v44  ;;  %v411_v45 = vld [vmem:[%s1841_s1 + $0x68] sm:$0xff]  ;;  %v425_v46 = vld [vmem:[%s1842_s2 + $0x58] sm:$0xff] }
  0x4e   : > { %v249_v55 = vadd.f32 %v248_v51, %v1353_v47 }
  0x4f   : > { %v270_v56 = vadd.f32 %v269_v52, %v1356_v48 }
  0x50   : > { %576 = vperm.xlu1 %970, %v414_v29   ;;  %514 = vperm.xlu0 %969, %v408_v30   ;;  %v250_v61 = vadd.f32 %v249_v55, %v1367_v53  ;;  %v412_v55 = vld [vmem:[%s1841_s1 + $0x70] sm:$0xff] }
  0x51   : > { %v271_v62 = vadd.f32 %v270_v56, %v1370_v54  ;;  %v426_v56 = vld [vmem:[%s1842_s2 + $0x60] sm:$0xff] }
  0x52   : > { %v251_v1 = vadd.f32 %v250_v61, %v1375_v57  ;;  %v413_v61 = vld [vmem:[%s1841_s1 + $0x78] sm:$0xff] }
  0x53   : > { %v272_v2 = vadd.f32 %v271_v62, %v1378_v58  ;;  %v427_v62 = vld [vmem:[%s1842_s2 + $0x68] sm:$0xff] }
  0x54   : > { %586 = vperm.xlu1 %970, %v416_v39   ;;  %581 = vperm.xlu0 %969, %v415_v40   ;;  %v252_v7 = vadd.f32 %v251_v1, %v1389_v63 }
  0x55   : > { %v273_v8 = vadd.f32 %v272_v2, %v1392_v0 }
  0x56   : > { %v253_v19 = vadd.f32 %v252_v7, %v1397_v3 }
  0x57   : > { %v274_v20 = vadd.f32 %v273_v8, %v1400_v4 }
  0x58   : > { %596 = vperm.xlu1 %970, %v418_v49   ;;  %591 = vperm.xlu0 %969, %v417_v50   ;;  %v254_v29 = vadd.f32 %v253_v19, %v1411_v15 }
  0x59   : > { %v275_v30 = vadd.f32 %v274_v20, %v1414_v16 }
  0x5a   : > { %v255_v31 = vadd.f32 %v254_v29, %v1419_v21 }
  0x5b   : > { %v276_v32 = vadd.f32 %v275_v30, %v1422_v22 }
  0x5c   : > { %606 = vperm.xlu1 %970, %v420_v59   ;;  %601 = vperm.xlu0 %969, %v419_v60   ;;  %v256_v39 = vrot.slane %v255_v31, 4 }
  0x5d   : > { %v277_v40 = vrot.slane %v276_v32, 4 }
  0x5e   : > { %v257_v41 = vadd.f32 %v256_v39, %v255_v31 }
  0x5f   : > { %v278_v42 = vadd.f32 %v277_v40, %v276_v32 }
  0x60   : > { %616 = vperm.xlu1 %970, %v422_v5   ;;  %611 = vperm.xlu0 %969, %v421_v6   ;;  %v258_v49 = vrot.slane %v257_v41, 2  ;;  %v429_v5 = vld [vmem:[%s1842_s2 + $0x78] sm:$0xff]  ;;  %v428_v6 = vld [vmem:[%s1842_s2 + $0x70] sm:$0xff] }
  0x61   : > { %v279_v50 = vrot.slane %v278_v42, 2 }
  0x62   : > { %v259_v51 = vadd.f32 %v258_v49, %v257_v41 }
  0x63   : > { %v280_v52 = vadd.f32 %v279_v50, %v278_v42 }
  0x64   : > { %519 = vperm.xlu1 %970, %v409_v25   ;;  %621 = vperm.xlu0 %969, %v423_v26   ;;  %v260_v59 = vrot.slane %v259_v51, 1 }
  0x65   : > { %v281_v60 = vrot.slane %v280_v52, 1 }
  0x66   : > { %v261_v1 = vadd.f32 %v260_v59, %v259_v51 }
  0x67   : > { %v282_v2 = vadd.f32 %v281_v60, %v280_v52 }
  0x68   : > { %524 = vperm.xlu1 %970, %v410_v35   ;;  %626 = vperm.xlu0 %969, %v424_v36   ;;  %v1464_v7 = vmul.f32 0.0078125, %v261_v1 }
  0x69   : > { %v1466_v8 = vmul.f32 0.0078125, %v282_v2 }
  0x6a   : > { %v1470_v19 = vsub.f32 %v1265_v9, %v1464_v7  ;;  %v1478_v25 = vsub.f32 %v1271_v11, %v1464_v7  ;;  %v1486_v29 = vsub.f32 %v1277_v13, %v1464_v7  ;;  %v1522_v35 = vsub.f32 %v1309_v27, %v1464_v7 }
  0x6b   : > { %v1474_v20 = vsub.f32 %v1268_v10, %v1466_v8  ;;  %v1482_v26 = vsub.f32 %v1274_v12, %v1466_v8  ;;  %v1490_v9 = vsub.f32 %v1280_v14, %v1466_v8  ;;  %v1494_v10 = vsub.f32 %v1287_v17, %v1464_v7 }
  0x6c   : > { %529 = vperm.xlu1 %970, %v411_v45   ;;  %631 = vperm.xlu0 %969, %v425_v46   ;;  %v1498_v11 = vsub.f32 %v1290_v18, %v1466_v8  ;;  %v318_v12 = vmul.f32 %v1470_v19, %v1470_v19  ;;  %v320_v13 = vmul.f32 %v1478_v25, %v1478_v25 }
  0x6d   : > { %v319_v30 = vmul.f32 %v1474_v20, %v1474_v20  ;;  %v321_v14 = vmul.f32 %v1482_v26, %v1482_v26  ;;  %v1510_v17 = vsub.f32 %v1301_v23, %v1464_v7  ;;  %v1514_v18 = vsub.f32 %v1304_v24, %v1466_v8 }
  0x6e   : > { %v322_v31 = vmul.f32 %v1486_v29, %v1486_v29  ;;  %v323_v32 = vmul.f32 %v1490_v9, %v1490_v9  ;;  %v1526_v36 = vsub.f32 %v1312_v28, %v1466_v8  ;;  %v324_v23 = vmul.f32 %v1494_v10, %v1494_v10 }
  0x6f   : > { %v325_v24 = vmul.f32 %v1498_v11, %v1498_v11  ;;  %v350_v39 = vadd.f32 %v320_v13, %v318_v12  ;;  %v371_v40 = vadd.f32 %v321_v14, %v319_v30  ;;  %v1534_v41 = vsub.f32 %v1323_v33, %v1464_v7 }
  0x70   : > { %534 = vperm.xlu1 %970, %v412_v55   ;;  %636 = vperm.xlu0 %969, %v426_v56   ;;  %v1538_v27 = vsub.f32 %v1326_v34, %v1466_v8  ;;  %v326_v28 = vmul.f32 %v1510_v17, %v1510_v17  ;;  %v327_v42 = vmul.f32 %v1514_v18, %v1514_v18 }
  0x71   : > { %v351_v45 = vadd.f32 %v350_v39, %v322_v31  ;;  %v372_v46 = vadd.f32 %v371_v40, %v323_v32  ;;  %v1546_v49 = vsub.f32 %v1331_v37, %v1464_v7  ;;  %v1550_v33 = vsub.f32 %v1334_v38, %v1466_v8 }
  0x72   : > { %v328_v34 = vmul.f32 %v1522_v35, %v1522_v35  ;;  %v329_v50 = vmul.f32 %v1526_v36, %v1526_v36  ;;  %v1558_v55 = vsub.f32 %v1345_v43, %v1464_v7  ;;  %v1562_v37 = vsub.f32 %v1348_v44, %v1466_v8 }
  0x73   : > { %v352_v51 = vadd.f32 %v351_v45, %v324_v23  ;;  %v373_v52 = vadd.f32 %v372_v46, %v325_v24  ;;  %v330_v38 = vmul.f32 %v1534_v41, %v1534_v41  ;;  %v331_v56 = vmul.f32 %v1538_v27, %v1538_v27 }
  0x74   : > { %539 = vperm.xlu1 %970, %v413_v61   ;;  %641 = vperm.xlu0 %969, %v427_v62   ;;  %v1570_v61 = vsub.f32 %v1353_v47, %v1464_v7  ;;  %v1574_v43 = vsub.f32 %v1356_v48, %v1466_v8  ;;  %v332_v44 = vmul.f32 %v1546_v49, %v1546_v49 }
  0x75   : > { %v353_v59 = vadd.f32 %v352_v51, %v326_v28  ;;  %v374_v60 = vadd.f32 %v373_v52, %v327_v42  ;;  %v333_v62 = vmul.f32 %v1550_v33, %v1550_v33  ;;  %v1586_v47 = vsub.f32 %v1370_v54, %v1466_v8 }
  0x76   : > { %v334_v48 = vmul.f32 %v1558_v55, %v1558_v55  ;;  %v1594_v13 = vsub.f32 %v1375_v57, %v1464_v7  ;;  %v336_v54 = vmul.f32 %v1570_v61, %v1570_v61  ;;  %v337_v14 = vmul.f32 %v1574_v43, %v1574_v43 }
  0x77   : > { %v354_v1 = vadd.f32 %v353_v59, %v328_v34  ;;  %v375_v2 = vadd.f32 %v374_v60, %v329_v50  ;;  %v1606_v23 = vsub.f32 %v1389_v63, %v1464_v7  ;;  %v1610_v57 = vsub.f32 %v1392_v0, %v1466_v8 }
  0x78   : > { %651 = vperm.xlu1 %970, %v429_v5   ;;  %646 = vperm.xlu0 %969, %v428_v6   ;;  %v1582_v5 = vsub.f32 %v1367_v53, %v1464_v7  ;;  %v335_v6 = vmul.f32 %v1562_v37, %v1562_v37  ;;  %v1598_v53 = vsub.f32 %v1378_v58, %v1466_v8 }
  0x79   : > { %v355_v12 = vadd.f32 %v354_v1, %v330_v38  ;;  %v376_v30 = vadd.f32 %v375_v2, %v331_v56  ;;  %v339_v24 = vmul.f32 %v1586_v47, %v1586_v47  ;;  %v1618_v28 = vsub.f32 %v1397_v3, %v1464_v7 }
  0x7a   : > { %v338_v58 = vmul.f32 %v1582_v5, %v1582_v5  ;;  %v1622_v63 = vsub.f32 %v1400_v4, %v1466_v8  ;;  %v340_v0 = vmul.f32 %v1594_v13, %v1594_v13  ;;  %v341_v42 = vmul.f32 %v1598_v53, %v1598_v53 }
  0x7b   : > { %v356_v31 = vadd.f32 %v355_v12, %v332_v44  ;;  %v377_v32 = vadd.f32 %v376_v30, %v333_v62  ;;  %v1630_v34 = vsub.f32 %v1411_v15, %v1464_v7  ;;  %v1634_v3 = vsub.f32 %v1414_v16, %v1466_v8 }
  0x7c   : > { %v342_v4 = vmul.f32 %v1606_v23, %v1606_v23  ;;  %v343_v50 = vmul.f32 %v1610_v57, %v1610_v57  ;;  %v1642_v38 = vsub.f32 %v1419_v21, %v1464_v7  ;;  %v1646_v15 = vsub.f32 %v1422_v22, %v1466_v8 }
  0x7d   : > { %v357_v39 = vadd.f32 %v356_v31, %v334_v48  ;;  %v378_v40 = vadd.f32 %v377_v32, %v335_v6  ;;  %v344_v16 = vmul.f32 %v1618_v28, %v1618_v28  ;;  %v345_v56 = vmul.f32 %v1622_v63, %v1622_v63 }
  0x7e   : > { %v346_v44 = vmul.f32 %v1630_v34, %v1630_v34  ;;  %v347_v62 = vmul.f32 %v1634_v3, %v1634_v3  ;;  %v348_v22 = vmul.f32 %v1642_v38, %v1642_v38  ;;  %v349_v8 = vmul.f32 %v1646_v15, %v1646_v15 }
  0x7f   : > { %v358_v45 = vadd.f32 %v357_v39, %v336_v54  ;;  %v379_v46 = vadd.f32 %v378_v40, %v337_v14 }
  0x81   : > { %v359_v51 = vadd.f32 %v358_v45, %v338_v58  ;;  %v380_v52 = vadd.f32 %v379_v46, %v339_v24 }
  0x83   : > { %v360_v59 = vadd.f32 %v359_v51, %v340_v0  ;;  %v381_v60 = vadd.f32 %v380_v52, %v341_v42 }
  0x85   : > { %v361_v21 = vadd.f32 %v360_v59, %v342_v4  ;;  %v382_v7 = vadd.f32 %v381_v60, %v343_v50 }
  0x87   : > { %v362_v1 = vadd.f32 %v361_v21, %v344_v16  ;;  %v383_v2 = vadd.f32 %v382_v7, %v345_v56 }
  0x89   : > { %v363_v48 = vadd.f32 %v362_v1, %v346_v44  ;;  %v384_v6 = vadd.f32 %v383_v2, %v347_v62 }
  0x8b   : > { %v364_v12 = vadd.f32 %v363_v48, %v348_v22  ;;  %v385_v30 = vadd.f32 %v384_v6, %v349_v8 }
  0x8d   : > { %v365_v54 = vrot.slane %v364_v12, 4  ;;  %v386_v14 = vrot.slane %v385_v30, 4 }
  0x8f   : > { %v366_v31 = vadd.f32 %v365_v54, %v364_v12  ;;  %v387_v32 = vadd.f32 %v386_v14, %v385_v30 }
  0x91   : > { %v367_v58 = vrot.slane %v366_v31, 2  ;;  %v388_v24 = vrot.slane %v387_v32, 2 }
  0x93   : > { %v368_v39 = vadd.f32 %v367_v58, %v366_v31  ;;  %v389_v40 = vadd.f32 %v388_v24, %v387_v32 }
  0x95   : > { %v369_v0 = vrot.slane %v368_v39, 1  ;;  %v390_v42 = vrot.slane %v389_v40, 1 }
  0x97   : > { %v370_v45 = vadd.f32 %v369_v0, %v368_v39  ;;  %v391_v46 = vadd.f32 %v390_v42, %v389_v40 }
  0x99   : > { %v392_v4 = vmul.f32 0.0078125, %v370_v45  ;;  %v393_v50 = vmul.f32 0.0078125, %v391_v46 }
  0x9b   : > { %v394_v51 = vadd.f32 1e-05, %v392_v4  ;;  %v395_v52 = vadd.f32 1e-05, %v393_v50 }
  0x9d   : > { %971 = vrsqrt.f32 %v394_v51 }
  0x9e   : > { %973 = vrsqrt.f32 %v395_v52 }
  0xa7   : > { %v1660_v21 = vpop.eup %971 }
  0xa8   : > { %v1662_v7 = vpop.eup %973  ;;  %v430_v1 = vmul.f32 %v1660_v21, %v1470_v19  ;;  %v432_v54 = vmul.f32 %v1660_v21, %v1478_v25  ;;  %v438_v52 = vmul.f32 %v1660_v21, %v1510_v17 }
  0xa9   : > { %v431_v2 = vmul.f32 %v1662_v7, %v1474_v20  ;;  %v433_v14 = vmul.f32 %v1662_v7, %v1482_v26  ;;  %v434_v20 = vmul.f32 %v1660_v21, %v1486_v29  ;;  %v435_v24 = vmul.f32 %v1662_v7, %v1490_v9 }
  0xaa   : > { %v436_v26 = vmul.f32 %v1660_v21, %v1494_v10  ;;  %v437_v50 = vmul.f32 %v1662_v7, %v1498_v11  ;;  %v440_v11 = vmul.f32 %v1660_v21, %v1522_v35 }
  0xbb   : > { %v475_v16 = vpop.permute.xlu1 %474  ;;  %v465_v56 = vpop.permute.xlu0 %464 }
  0xbc   : > { %v542_v12 = vmul.f32 %v465_v56, %v430_v1  ;;  %v543_v30 = vmul.f32 %v465_v56, %v431_v2  ;;  %v546_v46 = vmul.f32 %v475_v16, %v434_v20  ;;  %v547_v4 = vmul.f32 %v475_v16, %v435_v24 }
  0xbd   : > { %v439_v2 = vmul.f32 %v1662_v7, %v1514_v18  ;;  %v442_v18 = vmul.f32 %v1660_v21, %v1534_v41  ;;  %v443_v24 = vmul.f32 %v1662_v7, %v1538_v27 }
  0xbf   : > { %v480_v59 = vpop.permute.xlu1 %479  ;;  %v470_v60 = vpop.permute.xlu0 %469 }
  0xc0   : > { %v544_v39 = vmul.f32 %v470_v60, %v432_v54  ;;  %v545_v40 = vmul.f32 %v470_v60, %v433_v14  ;;  %v548_v60 = vmul.f32 %v480_v59, %v436_v26  ;;  %v549_v1 = vmul.f32 %v480_v59, %v437_v50 }
  0xc1   : > { %v447_v26 = vmul.f32 %v1662_v7, %v1562_v37 }
  0xc3   : > { %v490_v44 = vpop.permute.xlu1 %489  ;;  %v485_v62 = vpop.permute.xlu0 %484 }
  0xc4   : > { %v550_v54 = vmul.f32 %v485_v62, %v438_v52  ;;  %v551_v14 = vmul.f32 %v485_v62, %v439_v2  ;;  %v444_v62 = vmul.f32 %v1660_v21, %v1546_v49  ;;  %v452_v2 = vmul.f32 %v1660_v21, %v1594_v13 }
  0xc5   : > { %v455_v13 = vmul.f32 %v1662_v7, %v1610_v57  ;;  %v458_v57 = vmul.f32 %v1660_v21, %v1630_v34 }
  0xc7   : > { %v1664_v22 = vpop.permute.xlu1 %499  ;;  %v1666_v8 = vpop.permute.xlu0 %494 }
  0xc8   : > { %v555_v41 = vmul.f32 %v1666_v8, %v443_v24 }
  0xcb   : > { %v1672_v48 = vpop.permute.xlu1 %509  ;;  %v1674_v6 = vpop.permute.xlu0 %504 }
  0xcf   : > { %v577_v31 = vpop.permute.xlu1 %576  ;;  %v1680_v32 = vpop.permute.xlu0 %514 }
  0xd0   : > { %v654_v58 = vadd.f32 %v577_v31, %v542_v12  ;;  %v655_v19 = vadd.f32 %v577_v31, %v543_v30  ;;  %v441_v30 = vmul.f32 %v1662_v7, %v1526_v36 }
  0xd2   : > { %718 = vxpose.xlu1.b32.start [1/16] %v655_v19, 128  ;;  %686 = vxpose.xlu0.b32.start [1/16] %v654_v58, 128  ;;  %v552_v19 = vmul.f32 %v490_v44, %v440_v11  ;;  %v553_v20 = vmul.f32 %v490_v44, %v441_v30  ;;  %v454_v11 = vmul.f32 %v1660_v21, %v1606_v23 }
  0xd3   : > { %v587_v0 = vpop.permute.xlu1 %586  ;;  %v582_v25 = vpop.permute.xlu0 %581 }
  0xd4   : > { %v656_v42 = vadd.f32 %v582_v25, %v544_v39  ;;  %v657_v45 = vadd.f32 %v582_v25, %v545_v40  ;;  %v658_v9 = vadd.f32 %v587_v0, %v546_v46  ;;  %v659_v51 = vadd.f32 %v587_v0, %v547_v4 }
  0xd5   : > { %v445_v40 = vmul.f32 %v1662_v7, %v1550_v33  ;;  %v554_v0 = vmul.f32 %v1666_v8, %v442_v18  ;;  %v448_v4 = vmul.f32 %v1660_v21, %v1570_v61 }
  0xd6   : > { %719 = vxpose.xlu1.b32.cont [2/16] %v657_v45, 128  ;;  %687 = vxpose.xlu0.b32.cont [2/16] %v656_v42, 128  ;;  %v446_v42 = vmul.f32 %v1660_v21, %v1558_v55  ;;  %v556_v45 = vmul.f32 %v1664_v22, %v444_v62 }
  0xd7   : > { %v592_v29 = vpop.permute.xlu0 %591  ;;  %v597_v56 = vpop.permute.xlu1 %596  ;;  %v557_v49 = vmul.f32 %v1664_v22, %v445_v40 }
  0xd8   : > { %v660_v16 = vadd.f32 %v592_v29, %v548_v60  ;;  %v661_v12 = vadd.f32 %v592_v29, %v549_v1  ;;  %v662_v59 = vadd.f32 %v597_v56, %v550_v54  ;;  %v663_v31 = vadd.f32 %v597_v56, %v551_v14 }
  0xd9   : > { %v449_v29 = vmul.f32 %v1662_v7, %v1574_v43  ;;  %v558_v55 = vmul.f32 %v1674_v6, %v446_v42  ;;  %v560_v56 = vmul.f32 %v1672_v48, %v448_v4  ;;  %v451_v60 = vmul.f32 %v1662_v7, %v1586_v47 }
  0xda   : > { %720 = vxpose.xlu1.b32.cont [3/16] %v659_v51, 128  ;;  %688 = vxpose.xlu0.b32.cont [3/16] %v658_v9, 128  ;;  %v559_v9 = vmul.f32 %v1674_v6, %v447_v26  ;;  %v450_v51 = vmul.f32 %v1660_v21, %v1582_v5 }
  0xdb   : > { %v602_v10 = vpop.permute.xlu0 %601  ;;  %v607_v17 = vpop.permute.xlu1 %606  ;;  %v561_v61 = vmul.f32 %v1672_v48, %v449_v29  ;;  %v563_v5 = vmul.f32 %v1680_v32, %v451_v60 }
  0xdc   : > { %v664_v35 = vadd.f32 %v602_v10, %v552_v19  ;;  %v665_v36 = vadd.f32 %v602_v10, %v553_v20  ;;  %v666_v25 = vadd.f32 %v607_v17, %v554_v0  ;;  %v667_v27 = vadd.f32 %v607_v17, %v555_v41 }
  0xdd   : > { %v562_v10 = vmul.f32 %v1680_v32, %v450_v51 }
  0xde   : > { %721 = vxpose.xlu1.b32.cont [4/16] %v661_v12, 128  ;;  %689 = vxpose.xlu0.b32.cont [4/16] %v660_v16, 128  ;;  %v453_v16 = vmul.f32 %v1662_v7, %v1598_v53  ;;  %v456_v53 = vmul.f32 %v1660_v21, %v1618_v28 }
  0xdf   : > { %v612_v58 = vpop.permute.xlu0 %611  ;;  %v617_v39 = vpop.permute.xlu1 %616 }
  0xe0   : > { %v668_v46 = vadd.f32 %v612_v58, %v556_v45  ;;  %v669_v8 = vadd.f32 %v612_v58, %v557_v49  ;;  %v670_v22 = vadd.f32 %v617_v39, %v558_v55  ;;  %v671_v37 = vadd.f32 %v617_v39, %v559_v9 }
  0xe1   : > { %v457_v58 = vmul.f32 %v1662_v7, %v1622_v63  ;;  %v460_v63 = vmul.f32 %v1660_v21, %v1642_v38 }
  0xe2   : > { %722 = vxpose.xlu1.b32.cont [5/16] %v663_v31, 128  ;;  %690 = vxpose.xlu0.b32.cont [5/16] %v662_v59, 128 }
  0xe3   : > { %v622_v44 = vpop.permute.xlu0 %621  ;;  %v520_v33 = vpop.permute.xlu1 %519 }
  0xe4   : > { %v672_v1 = vadd.f32 %v622_v44, %v560_v56  ;;  %v673_v6 = vadd.f32 %v622_v44, %v561_v61  ;;  %v564_v54 = vmul.f32 %v520_v33, %v452_v2  ;;  %v565_v14 = vmul.f32 %v520_v33, %v453_v16 }
  0xe5   : > { %v461_v44 = vmul.f32 %v1662_v7, %v1646_v15 }
  0xe6   : > { %723 = vxpose.xlu1.b32.cont [6/16] %v665_v36, 128  ;;  %691 = vxpose.xlu0.b32.cont [6/16] %v664_v35, 128  ;;  %v459_v36 = vmul.f32 %v1662_v7, %v1634_v3 }
  0xe7   : > { %v627_v50 = vpop.permute.xlu0 %626  ;;  %v525_v52 = vpop.permute.xlu1 %524 }
  0xe8   : > { %v674_v12 = vadd.f32 %v627_v50, %v562_v10  ;;  %v675_v47 = vadd.f32 %v627_v50, %v563_v5  ;;  %v566_v31 = vmul.f32 %v525_v52, %v454_v11  ;;  %v567_v18 = vmul.f32 %v525_v52, %v455_v13 }
  0xea   : > { %724 = vxpose.xlu1.b32.cont [7/16] %v667_v27, 128  ;;  %692 = vxpose.xlu0.b32.cont [7/16] %v666_v25, 128 }
  0xeb   : > { %v632_v43 = vpop.permute.xlu0 %631  ;;  %v530_v48 = vpop.permute.xlu1 %529 }
  0xec   : > { %v676_v32 = vadd.f32 %v632_v43, %v564_v54  ;;  %v677_v17 = vadd.f32 %v632_v43, %v565_v14  ;;  %v568_v24 = vmul.f32 %v530_v48, %v456_v53  ;;  %v569_v35 = vmul.f32 %v530_v48, %v457_v58 }
  0xee   : > { %725 = vxpose.xlu1.b32.cont [8/16] %v669_v8, 128  ;;  %693 = vxpose.xlu0.b32.cont [8/16] %v668_v46, 128 }
  0xef   : > { %v637_v30 = vpop.permute.xlu0 %636  ;;  %v535_v59 = vpop.permute.xlu1 %534 }
  0xf0   : > { %v678_v19 = vadd.f32 %v637_v30, %v566_v31  ;;  %v679_v20 = vadd.f32 %v637_v30, %v567_v18  ;;  %v570_v0 = vmul.f32 %v535_v59, %v458_v57  ;;  %v571_v41 = vmul.f32 %v535_v59, %v459_v36 }
  0xf2   : > { %726 = vxpose.xlu1.b32.cont [9/16] %v671_v37, 128  ;;  %694 = vxpose.xlu0.b32.cont [9/16] %v670_v22, 128 }
  0xf3   : > { %v642_v23 = vpop.permute.xlu0 %641  ;;  %v540_v28 = vpop.permute.xlu1 %539 }
  0xf4   : > { %v680_v62 = vadd.f32 %v642_v23, %v568_v24  ;;  %v681_v39 = vadd.f32 %v642_v23, %v569_v35  ;;  %v572_v27 = vmul.f32 %v540_v28, %v460_v63  ;;  %v573_v42 = vmul.f32 %v540_v28, %v461_v44 }
  0xf6   : > { %727 = vxpose.xlu1.b32.cont [10/16] %v673_v6, 128  ;;  %695 = vxpose.xlu0.b32.cont [10/16] %v672_v1, 128 }
  0xf7   : > { %v647_v40 = vpop.permute.xlu0 %646  ;;  %v652_v3 = vpop.permute.xlu1 %651 }
  0xf8   : > { %v682_v34 = vadd.f32 %v647_v40, %v570_v0  ;;  %v683_v25 = vadd.f32 %v647_v40, %v571_v41  ;;  %v684_v45 = vadd.f32 %v652_v3, %v572_v27  ;;  %v685_v49 = vadd.f32 %v652_v3, %v573_v42 }
  0xfa   : > { %728 = vxpose.xlu1.b32.cont [11/16] %v675_v47, 128  ;;  %696 = vxpose.xlu0.b32.cont [11/16] %v674_v12, 128 }
  0xfe   : > { %729 = vxpose.xlu1.b32.cont [12/16] %v677_v17, 128  ;;  %697 = vxpose.xlu0.b32.cont [12/16] %v676_v32, 128 }
 0x102   : > { %730 = vxpose.xlu1.b32.cont [13/16] %v679_v20, 128  ;;  %698 = vxpose.xlu0.b32.cont [13/16] %v678_v19, 128 }
 0x106   : > { %731 = vxpose.xlu1.b32.cont [14/16] %v681_v39, 128  ;;  %699 = vxpose.xlu0.b32.cont [14/16] %v680_v62, 128 }
 0x10a   : > { %732 = vxpose.xlu1.b32.cont [15/16] %v683_v25, 128  ;;  %700 = vxpose.xlu0.b32.cont [15/16] %v682_v34, 128 }
 0x10e   : > { %733 = vxpose.xlu1.b32.end [16/16] %v685_v49, 128  ;;  %701 = vxpose.xlu0.b32.end [16/16] %v684_v45, 128 }
 0x152   : > { %v734_v38 = vpop.trf.xlu1  ;;  %v702_v21 = vpop.trf.xlu0 }
 0x153   : > { %766 = vst [vmem:[%s1750_s23 + $0x80] sm:$0xff] %v734_v38  ;;  %750 = vst [vmem:[%s1750_s23] sm:$0xff] %v702_v21 }
 0x156   : > { %v735_v15 = vpop.trf.xlu1  ;;  %v703_v7 = vpop.trf.xlu0 }
 0x157   : > { %767 = vst [vmem:[%s1750_s23 + $0x88] sm:$0xff] %v735_v15  ;;  %751 = vst [vmem:[%s1750_s23 + $0x8] sm:$0xff] %v703_v7 }
 0x15a   : > { %v736_v26 = vpop.trf.xlu1  ;;  %v704_v33 = vpop.trf.xlu0 }
 0x15b   : > { %768 = vst [vmem:[%s1750_s23 + $0x90] sm:$0xff] %v736_v26  ;;  %752 = vst [vmem:[%s1750_s23 + $0x10] sm:$0xff] %v704_v33 }
 0x15e   : > { %v737_v46 = vpop.trf.xlu1  ;;  %v705_v8 = vpop.trf.xlu0 }
 0x15f   : > { %769 = vst [vmem:[%s1750_s23 + $0x98] sm:$0xff] %v737_v46  ;;  %753 = vst [vmem:[%s1750_s23 + $0x18] sm:$0xff] %v705_v8 }
 0x162   : > { %v738_v4 = vpop.trf.xlu1  ;;  %v706_v50 = vpop.trf.xlu0 }
 0x163   : > { %770 = vst [vmem:[%s1750_s23 + $0xa0] sm:$0xff] %v738_v4  ;;  %754 = vst [vmem:[%s1750_s23 + $0x20] sm:$0xff] %v706_v50 }
 0x166   : > { %v739_v29 = vpop.trf.xlu1  ;;  %v707_v55 = vpop.trf.xlu0 }
 0x167   : > { %771 = vst [vmem:[%s1750_s23 + $0xa8] sm:$0xff] %v739_v29  ;;  %755 = vst [vmem:[%s1750_s23 + $0x28] sm:$0xff] %v707_v55 }
 0x16a   : > { %v740_v9 = vpop.trf.xlu1  ;;  %v708_v22 = vpop.trf.xlu0 }
 0x16b   : > { %772 = vst [vmem:[%s1750_s23 + $0xb0] sm:$0xff] %v740_v9  ;;  %756 = vst [vmem:[%s1750_s23 + $0x30] sm:$0xff] %v708_v22 }
 0x16e   : > { %v741_v37 = vpop.trf.xlu1  ;;  %v709_v51 = vpop.trf.xlu0 }
 0x16f   : > { %773 = vst [vmem:[%s1750_s23 + $0xb8] sm:$0xff] %v741_v37  ;;  %757 = vst [vmem:[%s1750_s23 + $0x38] sm:$0xff] %v709_v51 }
 0x172   : > { %v742_v52 = vpop.trf.xlu1  ;;  %v710_v56 = vpop.trf.xlu0 }
 0x173   : > { %774 = vst [vmem:[%s1750_s23 + $0xc0] sm:$0xff] %v742_v52  ;;  %758 = vst [vmem:[%s1750_s23 + $0x40] sm:$0xff] %v710_v56 }
 0x176   : > { %v743_v61 = vpop.trf.xlu1  ;;  %v711_v60 = vpop.trf.xlu0 }
 0x177   : > { %775 = vst [vmem:[%s1750_s23 + $0xc8] sm:$0xff] %v743_v61  ;;  %759 = vst [vmem:[%s1750_s23 + $0x48] sm:$0xff] %v711_v60 }
 0x17a   : > { %v744_v43 = vpop.trf.xlu1  ;;  %v712_v1 = vpop.trf.xlu0 }
 0x17b   : > { %776 = vst [vmem:[%s1750_s23 + $0xd0] sm:$0xff] %v744_v43  ;;  %760 = vst [vmem:[%s1750_s23 + $0x50] sm:$0xff] %v712_v1 }
 0x17e   : > { %v745_v6 = vpop.trf.xlu1  ;;  %v713_v2 = vpop.trf.xlu0 }
 0x17f   : > { %777 = vst [vmem:[%s1750_s23 + $0xd8] sm:$0xff] %v745_v6  ;;  %761 = vst [vmem:[%s1750_s23 + $0x58] sm:$0xff] %v713_v2 }
 0x182   : > { %v746_v10 = vpop.trf.xlu1  ;;  %v714_v5 = vpop.trf.xlu0 }
 0x183   : > { %778 = vst [vmem:[%s1750_s23 + $0xe0] sm:$0xff] %v746_v10  ;;  %762 = vst [vmem:[%s1750_s23 + $0x60] sm:$0xff] %v714_v5 }
 0x186   : > { %v747_v16 = vpop.trf.xlu1  ;;  %v715_v48 = vpop.trf.xlu0 }
 0x187   : > { %779 = vst [vmem:[%s1750_s23 + $0xe8] sm:$0xff] %v747_v16  ;;  %763 = vst [vmem:[%s1750_s23 + $0x68] sm:$0xff] %v715_v48 }
 0x18a   : > { %v748_v12 = vpop.trf.xlu1  ;;  %v716_v47 = vpop.trf.xlu0 }
 0x18b   : > { %780 = vst [vmem:[%s1750_s23 + $0xf0] sm:$0xff] %v748_v12  ;;  %764 = vst [vmem:[%s1750_s23 + $0x70] sm:$0xff] %v716_v47 }
 0x18e   : > { %v749_v11 = vpop.trf.xlu1  ;;  %v717_v30 = vpop.trf.xlu0 }
 0x18f   : > { %781 = vst [vmem:[%s1750_s23 + $0xf8] sm:$0xff] %v749_v11  ;;  %765 = vst [vmem:[%s1750_s23 + $0x78] sm:$0xff] %v717_v30 }
 0x190   : > { %1018 = shalt.err (!%p1015_p5)
}
 0x191   : > { %s1019_s8 = scalar_lea.hbm %s1787_s4, 4096  ;;  %s1023_s10 = scalar_lea.hbm %s1843_s3, 8192 }
 0x192   : > { %p1020_p4 = scmp.ne.s32.totalorder %s1787_s4, %s1019_s8  ;;  %p1024_p12 = scmp.lt.u32.totalorder %s1787_s4, %s1843_s3 }
 0x193   : > { %p1025_p1 = scmp.lt.u32.totalorder %s1023_s10, %s1019_s8  ;;  %p1027_p8 = scmp.lt.u32.totalorder %s1019_s8, %s1787_s4 }
 0x194   : > { %p1021_p7 = pnand %p1020_p4, %p1851_p9 }
 0x195   : > { %p1026_p3 = por %p1025_p1, %p1024_p12 }
 0x196   : > { %p1022_p10 = pneg %p1021_p7 }
 0x197   : > { %p1028_p11 = por %p1027_p8, %p1026_p3 }
 0x199   : > { %p1029_p0 = pnand %p1028_p11, %p1022_p10 }
 0x19b   : > { %1032 = shalt.err (!%p1029_p0)
}
 0x19c   : > { %s1094_s23 = smov 128   ;;  %s1095_s18 = smov 8  }
 0x19d   : > { %904 = dma.vmem_to_hbm [thread:$0]  (%p1851_p9), %s1789_s28, 4096, %s1787_s4, %s783_s15, %s1094_s23, %s1094_s23, %s1095_s18  }
 0x19e PF: > { %s813_s29 = sand.u32 1, %s1067_s12   ;;  %p1852_p6 = scmp.ne.s32.totalorder %s1848_s27, 0 }
 0x19f   : > { %p1853_p13 = scmp.ge.s32.totalorder %s1087_s17, 2  ;;  %s814_s30 = scalar_lea.sflag [#allocation4], %s813_s29 }
 0x1a1   : > { %p911_p2 = pnand %p1853_p13, %p1852_p6 }
 0x1a3   : > { %1062 = dma.done.wait (!%p911_p2), %s814_s30, 4096  }
 0x1a4   : > { %1064 = vsyncadd (!%p911_p2), %s814_s30, 4294963200  ;;  %s19_s17 = sadd.s32 1, %s1087_s17   ;;  %s1854_s12 = smov %s1071_s13 }
 0x1a5   : > { %p16_p5 = scmp.ge.s32.totalorder %s19_s17, 4   ;;  %s1855_s13 = smov %s1075_s14 }
 0x1a6   : > { %s1856_s14 = smov %s1172_s26  ;;  %s1857_s15 = smov %s1083_s16 }
 0x1a7   : > { %s1858_s16 = smov %s1860_s20  ;;  %18 = sbr.rel (!%p16_p5) target bundleno = 6 (0x6), region = 77 }
 0x1ae   :  { %819 = vsyncpa [#allocation3], 1 }
 0x1af   :  { %821 = vsyncpa [#allocation3 + $0x1], 1 }
 0x1b0   :  { %822 = vsyncpa [#allocation4], 1 }
 0x1b1   :  { %824 = vsyncpa [#allocation4 + $0x1], 1 }

</bundles_post_ra>
